<compile_context>
chip_gen: v5e
topology: v5e:2x2
jax: 0.10.0
libtpu: 0.0.40
codegen_flags: <defaults>
</compile_context>

<pallas_src>
import math

import jax
import jax.numpy as jnp
from jax import lax
from jax.experimental import pallas as pl
from jax.experimental.pallas import tpu as pltpu


def _round_up(x, m):
    return ((x + m - 1) // m) * m


# ----------------------------------------------------------------------------
# Kernel: one (tm, Kdim) bf16 patch tile  x  K-major effective weight
# (Kdim, Cp) bf16 -> f32 MXU accumulation, f32 bias add, lane-dense f32 store.
# Weight and bias use constant index_maps, so they stay VMEM-resident across
# the whole (parallel) M grid.
# ----------------------------------------------------------------------------
def _conv_lora_matmul_kernel(p_ref, w_ref, b_ref, o_ref):
    acc = jnp.dot(p_ref[...], w_ref[...], preferred_element_type=jnp.float32)
    o_ref[...] = acc + b_ref[...]


def conv_lora_forward(x, weight, bias, lora_A, lora_B, scaling, kernel_size,
                      *, tm=512):
    """ConvLoRA.forward (r>0, not merged).  x: (N, Cin, H, W) NCHW, f32."""
    N, Cin, H, W = x.shape
    Cout = weight.shape[0]
    k = kernel_size
    OH, OW = H - k + 1, W - k + 1            # stride=1, padding=0 defaults
    M = N * OH * OW
    Kdim = k * k * Cin

    # ---- one-time, weight-sized prep (XLA glue; too small for its own
    #      Pallas launch): delta = (B@A).view(W.shape); w_eff = W + s*delta;
    #      then re-layout to K-major (Kdim, Cout) with K order (kh, kw, c). ----
    delta = (lora_B @ lora_A).reshape(Cout, Cin, k, k)     # row-major .view()
    w_eff = weight + scaling * delta                       # OIHW, f32
    w_kc = jnp.transpose(w_eff, (2, 3, 1, 0)).reshape(Kdim, Cout)

    # ---- im2col in bf16 (MXU operand dtype), column order (kh, kw, c) ----
    x_nhwc = jnp.transpose(x.astype(jnp.bfloat16), (0, 2, 3, 1))  # (N,H,W,Cin)
    taps = [x_nhwc[:, kh:kh + OH, kw:kw + OW, :]
            for kh in range(k) for kw in range(k)]          # (N, OH, OW, Cin)
    patches = jnp.stack(taps, axis=3).reshape(M, Kdim)      # (M, Kdim) bf16

    # ---- tile sizing / padding (no K-padding: block spans the full K dim) ----
    tm = max(8, _round_up(min(tm, M), 8))                   # mult. of 8, <= ~M
    Mp = _round_up(M, tm)
    Cp = _round_up(Cout, 128)                                # lane-dense output

    if Mp != M:
        patches = jnp.pad(patches, ((0, Mp - M), (0, 0)))
    w_p = w_kc.astype(jnp.bfloat16)
    if Cp != Cout:
        w_p = jnp.pad(w_p, ((0, 0), (0, Cp - Cout)))
    bias_p = bias.astype(jnp.float32).reshape(1, Cout)
    if Cp != Cout:
        bias_p = jnp.pad(bias_p, ((0, 0), (0, Cp - Cout)))

    grid = (Mp // tm,)
    out_p = pl.pallas_call(
        _conv_lora_matmul_kernel,
        out_shape=jax.ShapeDtypeStruct((Mp, Cp), jnp.float32),
        grid=grid,
        in_specs=[
            pl.BlockSpec((tm, Kdim), lambda i: (i, 0)),     # patch tiles (piped)
            pl.BlockSpec((Kdim, Cp), lambda i: (0, 0)),     # weight resident
            pl.BlockSpec((1, Cp), lambda i: (0, 0)),        # bias resident
        ],
        out_specs=pl.BlockSpec((tm, Cp), lambda i: (i, 0)),
        compiler_params=pltpu.CompilerParams(
            dimension_semantics=("parallel",),              # megacore on v7x
            vmem_limit_bytes=32 * 1024 * 1024,              # safe on all gens
        ),
    )(patches, w_p, bias_p)

    # ---- strip padding, back to NCHW ----
    out = out_p[:M, :Cout].reshape(N, OH, OW, Cout)
    return jnp.transpose(out, (0, 3, 1, 2))                 # (N, Cout, OH, OW)


if __name__ == "__main__":
    # ---- module hyper-params (small, consistent with ConvLoRA.__init__) ----
    N, Cin, H, W = 2, 4, 16, 16
    Cout, k = 8, 3
    r, lora_alpha = 2, 4
    scaling = lora_alpha / r

    key = jax.random.PRNGKey(0)
    k1, k2, k3, k4, k5 = jax.random.split(key, 5)

    # conv.weight / conv.bias (uniform, kaiming-uniform-ish bounds)
    fan_in = Cin * k * k
    bound = 1.0 / math.sqrt(fan_in)
    weight = jax.random.uniform(k1, (Cout, Cin, k, k), jnp.float32, -bound, bound)
    bias = jax.random.uniform(k2, (Cout,), jnp.float32, -bound, bound)

    # lora_A kaiming-uniform-ish; lora_B is zeros in __init__, but use small
    # random values here so the LoRA path is actually exercised.
    a_bound = math.sqrt(6.0 / (Cin * k))
    lora_A = jax.random.uniform(k3, (r * k, Cin * k), jnp.float32, -a_bound, a_bound)
    lora_B = 0.1 * jax.random.normal(k4, (Cout * k, r * k), jnp.float32)

    x = jax.random.normal(k5, (N, Cin, H, W), jnp.float32)

    # tm=128 -> 4 grid steps at this toy size, exercising the tiled pipeline.
    out = conv_lora_forward(x, weight, bias, lora_A, lora_B, scaling, k, tm=128)
    out = jax.block_until_ready(out)

    # Reference: identical math with bf16 matmul operands (the kernel feeds
    # the MXU bf16 with f32 accumulation), so the comparison stays tight.
    delta_ref = (lora_B @ lora_A).reshape(weight.shape)
    w_eff_ref = weight + delta_ref * scaling
    ref = lax.conv_general_dilated(
        x.astype(jnp.bfloat16), w_eff_ref.astype(jnp.bfloat16),
        window_strides=(1, 1), padding="VALID",
        dimension_numbers=("NCHW", "OIHW", "NCHW"),
        preferred_element_type=jnp.float32,
    ) + bias.reshape(1, Cout, 1, 1)

    assert out.shape == (N, Cout, H - k + 1, W - k + 1)
    err = float(jnp.max(jnp.abs(out - ref)))
    assert jnp.allclose(out, ref, atol=2e-3, rtol=2e-3), f"max abs err {err}"
    print("KERNEL_OK")
</pallas_src>

<mosaic_0001>
module attributes {stable_mosaic.version = 11 : i64} {
  func.func @_conv_lora_matmul_kernel(%arg0: i32, %arg1: memref<128x36xbf16, #tpu.memory_space<vmem>>, %arg2: memref<36x128xbf16, #tpu.memory_space<vmem>>, %arg3: memref<1x128xf32, #tpu.memory_space<vmem>>, %arg4: memref<128x128xf32, #tpu.memory_space<vmem>>) attributes {dimension_semantics = [#tpu.dimension_semantics<parallel>], iteration_bounds = array<i64: 4>, scalar_prefetch = 0 : i64, scratch_operands = 0 : i64, tpu.core_type = #tpu.core_type<tc>, window_params = [{transform_indices = @transform_0, window_bounds = array<i64: 128, 36>}, {pipeline_mode = #tpu.pipeline_mode<synchronous>, transform_indices = @transform_1, window_bounds = array<i64: 36, 128>}, {pipeline_mode = #tpu.pipeline_mode<synchronous>, transform_indices = @transform_2, window_bounds = array<i64: 1, 128>}, {transform_indices = @transform_3, window_bounds = array<i64: 128, 128>}]} {
    %c0 = arith.constant 0 : index
    %c0_0 = arith.constant 0 : index
    %0 = vector.load %arg1[%c0, %c0_0] : memref<128x36xbf16, #tpu.memory_space<vmem>>, vector<128x36xbf16>
    %c0_1 = arith.constant 0 : index
    %c0_2 = arith.constant 0 : index
    %1 = vector.load %arg2[%c0_1, %c0_2] : memref<36x128xbf16, #tpu.memory_space<vmem>>, vector<36x128xbf16>
    %cst = arith.constant dense<0.000000e+00> : vector<128x128xf32>
    %2 = tpu.matmul %0, %1, %cst {dimension_numbers = #tpu.dot_dimension_numbers<[1], [0], [0], [1], [0, 0, 1, 1], [], []>} : vector<128x36xbf16>, vector<36x128xbf16>, vector<128x128xf32> -> vector<128x128xf32>
    %c0_3 = arith.constant 0 : index
    %c0_4 = arith.constant 0 : index
    %3 = vector.load %arg3[%c0_3, %c0_4] : memref<1x128xf32, #tpu.memory_space<vmem>>, vector<1x128xf32>
    %4 = vector.broadcast %3 : vector<1x128xf32> to vector<128x128xf32>
    %5 = arith.addf %2, %4 : vector<128x128xf32>
    %c0_5 = arith.constant 0 : index
    %c0_6 = arith.constant 0 : index
    %6 = vector.load %arg4[%c0_5, %c0_6] : memref<128x128xf32, #tpu.memory_space<vmem>>, vector<128x128xf32>
    tpu.vector_store %arg4[%c0_5, %c0_6], %5 {strides = array<i32>} : memref<128x128xf32, #tpu.memory_space<vmem>>, vector<128x128xf32>,
    return
  }
  func.func @transform_0(%arg0: i32) -> (i32, i32) {
    %c0_i32 = arith.constant 0 : i32
    %c0_i32_0 = arith.constant 0 : i32
    return %arg0, %c0_i32 : i32, i32
  }
  func.func @transform_1(%arg0: i32) -> (i32, i32) {
    %c0_i32 = arith.constant 0 : i32
    %c0_i32_0 = arith.constant 0 : i32
    %c0_i32_1 = arith.constant 0 : i32
    return %c0_i32, %c0_i32_0 : i32, i32
  }
  func.func @transform_2(%arg0: i32) -> (i32, i32) {
    %c0_i32 = arith.constant 0 : i32
    %c0_i32_0 = arith.constant 0 : i32
    %c0_i32_1 = arith.constant 0 : i32
    return %c0_i32, %c0_i32_0 : i32, i32
  }
  func.func @transform_3(%arg0: i32) -> (i32, i32) {
    %c0_i32 = arith.constant 0 : i32
    %c0_i32_0 = arith.constant 0 : i32
    return %arg0, %c0_i32 : i32, i32
  }
}

</mosaic_0001>

<bundles_post_ra>
// kernel: tpu_custom_call.1
= control target key start
LH: loop header
LB: loop body
LE: loop exit
PB: predicated region body
PF: predicated region fallthrough
CT: control target
= control target key end

     0   :  { %8 = vsyncpa [#allocation3], 0  ;;  %s760_s0 = inlined_call_operand.vmem [shape: bf16[512,36], index: 0, kind: input, shape index: {}]   ;;  %s761_s1 = inlined_call_operand.vmem [shape: bf16[36,128], index: 1, kind: input, shape index: {}]   ;;  %s762_s2 = inlined_call_operand.vmem [shape: f32[1,128], index: 2, kind: input, shape index: {}]   ;;  %s763_s3 = inlined_call_operand.hbm [shape: f32[512,128], index: 3, kind: output, shape index: {}]  }
   0x1   :  { %10 = vsyncpa [#allocation3 + $0x1], 0  ;;  %s633_s12 = smov 0   ;;  %s635_s13 = smov 0  }
   0x2   :  { %s637_s14 = smov 0   ;;  %s639_s15 = smov 0  }
   0x3 LB: > { %s654_s16 = sadd.s32 4294967295, %s609_s15   ;;  %s425_s17 = sadd.s32 4294967294, %s609_s15   ;;  %s609_s15 = sphi %s639_s15, %s769_s15   ;;  %s605_s14 = sphi %s637_s14, %s768_s14   ;;  %s601_s13 = sphi %s635_s13, %s767_s13   ;;  %s597_s12 = sphi %s633_s12, %s766_s12  }
   0x4   : > { %s658_s18 = sadd.s32 1, %s609_s15   ;;  %s91_s19 = sadd.s32 1, %s605_s14 }
   0x5   : > { %s88_s20 = ssub.s32 %s609_s15, %s658_s18  ;;  %p101_p0 = scmp.ne.s32.totalorder %s605_s14, %s601_s13 }
   0x6   : > { %p89_p1 = scmp.eq.s32.totalorder %s88_s20, 0  ;;  %p102_p2 = scmp.eq.s32.totalorder %s654_s16, 3 }
   0x7   : > { %p107_p3 = scmp.ne.s32.totalorder %s601_s13, %s597_s12  ;;  %p108_p4 = scmp.eq.s32.totalorder %s425_s17, 3 }
   0x8   : > { %s669_s21 = scalar_select %p89_p1, %s605_s14, %s91_s19  }
   0x9   : > { %p671_p5 = por %p102_p2, %p101_p0  ;;  %p675_p6 = por %p108_p4, %p107_p3 }
   0xa   : > { %p428_p7 = scmp.ge.s32.totalorder %s609_s15, 1  ;;  %p141_p8 = scmp.lt.s32.totalorder %s609_s15, 5 }
   0xc   : > { %p142_p9 = pnand %p428_p7, %p141_p8 }
   0xd   : > { %s430_s26 = sshll.u32 (!%p142_p9), %s654_s16, 4  ;;  %s162_s8 = sand.u32 (!%p142_p9), 1, %s601_s13  }
   0xe   : > { %145 = sbr.rel (%p142_p9) target bundleno = 200 (0xc8), region = 32  ;;  %p166_p10 = scmp.lt.s32.totalorder (!%p142_p9), %s430_s26, 63 }
   0xf   : > { %s429_s9 = sshll.u32 (!%p142_p9), %s162_s8, 7  ;;  %s495_s19 = sshll.u32 (!%p142_p9), %s654_s16, 7 }
  0x10   : > { %s708_s17 = scalar_lea.vmem (!%p142_p9), [#allocation2], %s429_s9  ;;  %s359_s25 = scalar_lea.hbm (!%p142_p9), %s763_s3, %s495_s19 }
  0x11   : > { %s362_s16 = sshll.u32 (!%p142_p9), %s359_s25, 4  ;;  %s348_s27 = scalar_lea.sflag (!%p142_p9), [#allocation3], %s162_s8  ;;  %s363_s16 = int_to_ptr.hbm [resolvable:$true] %s362_s16 }
  0x12   : > { %s561_s28 = sshra.s32 (!%p142_p9), %s363_s16, 4  ;;  %s567_s5 = scalar_lea.hbm (!%p142_p9), %s763_s3, 512  ;;  %s562_s28 = int_to_ptr.hbm [resolvable:$true] %s561_s28 }
  0x13   : > { %v193_v0 = vld [vmem:[%s761_s1 + $0x10] sm:$0x3]  ;;  %vm278_vm0 = vcmask 1041408   ;;  %s771_s26 = smov (!%p166_p10, %s430_s26), 63  ;;  %v494_v4 = vld [vmem:[%s761_s1 + $0x8] sm:$0xff]  ;;  %v493_v5 = vld [vmem:[%s761_s1] sm:$0xff]  ;;  %p568_p0 = scmp.lt.s32.totalorder %s562_s28, %s763_s3 }
  0x14   : > { %v247_v1 = vunpack.c.l.b16 %v193_v0  ;;  %s431_s29 = sshll.u32 %s771_s26, 2  ;;  %vm253_vm1 = vcmask 293888   ;;  %v546_v14 = vld [vmem:[%s762_s2] ss:$0 sm:$0xff]  ;;  %s360_s26 = sshll.u32 %s708_s17, 4  ;;  %s361_s26 = int_to_ptr.vmem [resolvable:$true] %s360_s26 }
  0x15   : > { %s169_s7 = scalar_lea.vmem %s760_s0, %s431_s29  ;;  %s563_s29 = scalar_lea.hbm %s562_s28, 128 }
  0x16   : > { %v250_v2 = vpack.c.b16 %v247_v1, %v247_v1  ;;  %v485_v6 = vld [vmem:[%s169_s7] sm:$0xff]  ;;  %v487_v7 = vld [vmem:[%s169_s7 + $0x10] sm:$0xff]  ;;  %v486_v10 = vld [vmem:[%s169_s7 + $0x8] sm:$0xff]  ;;  %p564_p11 = scmp.ne.s32.totalorder %s562_s28, %s563_s29  ;;  %p569_p1 = scmp.lt.s32.totalorder %s567_s5, %s563_s29 }
  0x17   : > { %v489_v8 = vld [vmem:[%s169_s7 + $0x20] sm:$0xff]  ;;  %v491_v9 = vld [vmem:[%s169_s7 + $0x30] sm:$0xff]  ;;  %v488_v11 = vld [vmem:[%s169_s7 + $0x18] sm:$0xff] }
  0x18   : > { %v280_v3 = vsel %vm278_vm0, %v250_v2, 0  ;;  %v490_v12 = vld [vmem:[%s169_s7 + $0x28] sm:$0xff]  ;;  %v492_v13 = vld [vmem:[%s169_s7 + $0x38] sm:$0xff]  ;;  %p565_p12 = pnand %p564_p11, %p671_p5  ;;  %p570_p2 = por %p569_p1, %p568_p0 }
  0x19   : > { %287 = vmatpush.bf16.msra.mxu0 %v280_v3  ;;  %496 = vmatpush.bf16.msra.mxu1 %v280_v3 }
  0x1a   : > { %497 = vmatpush.bf16.msra.mxu2 %v280_v3  ;;  %498 = vmatpush.bf16.msra.mxu3 %v280_v3  ;;  %p566_p13 = pneg %p565_p12 }
  0x1c   : > { %p571_p3 = pnand %p570_p2, %p566_p13 }
  0x1d   : > { %288 = vmatpush.bf16.msra.mxu0 %v494_v4  ;;  %499 = vmatpush.bf16.msra.mxu1 %v494_v4 }
  0x1e   : > { %500 = vmatpush.bf16.msra.mxu2 %v494_v4  ;;  %501 = vmatpush.bf16.msra.mxu3 %v494_v4 }
  0x21   : > { %289 = vmatpush.bf16.msra.mxu0 %v493_v5  ;;  %502 = vmatpush.bf16.msra.mxu1 %v493_v5 }
  0x22   : > { %503 = vmatpush.bf16.msra.mxu2 %v493_v5  ;;  %504 = vmatpush.bf16.msra.mxu3 %v493_v5 }
  0x24   : > { %472 = vmatmul.msk.bf16.vlgmr.msra.gmra.mxu0 %vm253_vm1, %v485_v6  ;;  %474 = vmatmul.msk.bf16.vlgmr.msra.gmra.mxu1 %vm253_vm1, %v487_v7 }
  0x25   : > { %476 = vmatmul.msk.bf16.vlgmr.msra.gmra.mxu2 %vm253_vm1, %v489_v8  ;;  %478 = vmatmul.msk.bf16.vlgmr.msra.gmra.mxu3 %vm253_vm1, %v491_v9 }
  0x34   : > { %473 = vmatmul.msk.bf16.gmra.mxu0 %vm253_vm1, %v486_v10  ;;  %475 = vmatmul.msk.bf16.gmra.mxu1 %vm253_vm1, %v488_v11 }
  0x35   : > { %477 = vmatmul.msk.bf16.gmra.mxu2 %vm253_vm1, %v490_v12  ;;  %479 = vmatmul.msk.bf16.gmra.mxu3 %vm253_vm1, %v492_v13 }
  0xa1   : > { %v291_v15 = vpop.f32.mrf.mxu0  ;;  %v301_v16 = vpop.f32.mrf.mxu1 }
  0xa2   : > { %v292_v17 = vadd.f32 %v546_v14, %v291_v15  ;;  %v302_v18 = vadd.f32 %v546_v14, %v301_v16 }
  0xa4   : > { %331 = vst [vmem:[%s708_s17] sm:$0xff] %v292_v17 }
  0xa5   : > { %335 = vst [vmem:[%s708_s17 + $0x20] sm:$0xff] %v302_v18 }
  0xa8   : > { %v311_v19 = vpop.f32.mrf.mxu2  ;;  %v321_v20 = vpop.f32.mrf.mxu3 }
  0xa9   : > { %v312_v21 = vadd.f32 %v546_v14, %v311_v19  ;;  %v322_v22 = vadd.f32 %v546_v14, %v321_v20  ;;  %v293_v23 = vpop.f32.mrf.mxu0  ;;  %v303_v24 = vpop.f32.mrf.mxu1 }
  0xaa   : > { %v294_v25 = vadd.f32 %v546_v14, %v293_v23  ;;  %v304_v26 = vadd.f32 %v546_v14, %v303_v24 }
  0xab   : > { %339 = vst [vmem:[%s708_s17 + $0x40] sm:$0xff] %v312_v21 }
  0xac   : > { %343 = vst [vmem:[%s708_s17 + $0x60] sm:$0xff] %v322_v22 }
  0xad   : > { %332 = vst [vmem:[%s708_s17 + $0x8] sm:$0xff] %v294_v25 }
  0xae   : > { %336 = vst [vmem:[%s708_s17 + $0x28] sm:$0xff] %v304_v26 }
  0xb0   : > { %v313_v27 = vpop.f32.mrf.mxu2  ;;  %v323_v28 = vpop.f32.mrf.mxu3 }
  0xb1   : > { %v314_v29 = vadd.f32 %v546_v14, %v313_v27  ;;  %v324_v30 = vadd.f32 %v546_v14, %v323_v28  ;;  %v296_v31 = vpop.f32.mrf.mxu0  ;;  %v306_v32 = vpop.f32.mrf.mxu1 }
  0xb2   : > { %v297_v33 = vadd.f32 %v546_v14, %v296_v31  ;;  %v307_v34 = vadd.f32 %v546_v14, %v306_v32 }
  0xb3   : > { %340 = vst [vmem:[%s708_s17 + $0x48] sm:$0xff] %v314_v29 }
  0xb4   : > { %344 = vst [vmem:[%s708_s17 + $0x68] sm:$0xff] %v324_v30 }
  0xb5   : > { %333 = vst [vmem:[%s708_s17 + $0x10] sm:$0xff] %v297_v33 }
  0xb6   : > { %337 = vst [vmem:[%s708_s17 + $0x30] sm:$0xff] %v307_v34 }
  0xb8   : > { %v316_v35 = vpop.f32.mrf.mxu2  ;;  %v326_v36 = vpop.f32.mrf.mxu3 }
  0xb9   : > { %v317_v37 = vadd.f32 %v546_v14, %v316_v35  ;;  %v327_v38 = vadd.f32 %v546_v14, %v326_v36  ;;  %v298_v39 = vpop.f32.mrf.mxu0  ;;  %v308_v40 = vpop.f32.mrf.mxu1 }
  0xba   : > { %v299_v41 = vadd.f32 %v546_v14, %v298_v39  ;;  %v309_v42 = vadd.f32 %v546_v14, %v308_v40 }
  0xbb   : > { %341 = vst [vmem:[%s708_s17 + $0x50] sm:$0xff] %v317_v37 }
  0xbc   : > { %345 = vst [vmem:[%s708_s17 + $0x70] sm:$0xff] %v327_v38 }
  0xbd   : > { %334 = vst [vmem:[%s708_s17 + $0x18] sm:$0xff] %v299_v41 }
  0xbe   : > { %338 = vst [vmem:[%s708_s17 + $0x38] sm:$0xff] %v309_v42 }
  0xc0   : > { %v318_v43 = vpop.f32.mrf.mxu2  ;;  %v328_v44 = vpop.f32.mrf.mxu3 }
  0xc1   : > { %v319_v45 = vadd.f32 %v546_v14, %v318_v43  ;;  %v329_v46 = vadd.f32 %v546_v14, %v328_v44 }
  0xc3   : > { %342 = vst [vmem:[%s708_s17 + $0x58] sm:$0xff] %v319_v45 }
  0xc4   : > { %346 = vst [vmem:[%s708_s17 + $0x78] sm:$0xff] %v329_v46 }
  0xc5   : > { %574 = shalt.err (!%p571_p3)
}
  0xc6   : > { %s611_s8 = smov 128   ;;  %s612_s9 = smov 8  }
  0xc7   : > { %505 = dma.vmem_to_hbm [thread:$0]  (%p671_p5), %s361_s26, 2048, %s363_s16, %s348_s27, %s611_s8, %s611_s8, %s612_s9  }
  0xc8 PF: > { %p511_p4 = scmp.ge.s32.totalorder %s609_s15, 2  ;;  %s377_s10 = sand.u32 1, %s597_s12  }
  0xc9   : > { %s378_s11 = scalar_lea.sflag [#allocation3], %s377_s10 }
  0xca   : > { %p508_p7 = pnand %p511_p4, %p675_p6 }
  0xcc   : > { %p509_p8 = pneg %p508_p7 }
  0xce   : > { %592 = dma.done.wait (%p509_p8), %s378_s11, 2048  }
  0xcf   : > { %594 = vsyncadd (%p509_p8), %s378_s11, 4294965248  ;;  %p13_p9 = scmp.ge.s32.totalorder %s658_s18, 6   ;;  %s766_s12 = smov %s601_s13 }
  0xd0   : > { %s767_s13 = smov %s605_s14  ;;  %s768_s14 = smov %s669_s21 }
  0xd1   : > { %s769_s15 = smov %s658_s18  ;;  %15 = sbr.rel (!%p13_p9) target bundleno = 3 (0x3), region = 67 }
  0xd6   :  { %384 = vsyncpa [#allocation3], 1 }
  0xd7   :  { %386 = vsyncpa [#allocation3 + $0x1], 1 }

</bundles_post_ra>
